<compile_context>
chip_gen: v5e
topology: v5e:2x2
jax: 0.10.0
libtpu: 0.0.40
codegen_flags: <defaults>
</compile_context>

<pallas_src>
import functools

import jax
import jax.numpy as jnp
from jax.experimental import pallas as pl
from jax.experimental.pallas import tpu as pltpu


def _round_up(v, m):
    return (v + m - 1) // m * m


def _residual_block_kernel(x_ref, w_ref, p_ref, o_ref, *, valid_len, chp, bblk):
    # x_ref: (Bblk, Cip, Tp)   zero-padded inputs for this batch block
    # w_ref: (2*Chp, 3*Cip)    fused conv weights [GLU value half ; gate half]
    # p_ref: (Bp, 4, Chp, 1)   grid-resident [gamma_a, beta_a, gamma_b, beta_b]
    # o_ref: (Bblk, Chp, Tp)   GLU output (padded; wrapper slices to (Ch, T))
    b0 = pl.program_id(0) * bblk
    w = w_ref[...]                                        # loaded once per step
    tp = x_ref.shape[-1]

    col = jax.lax.broadcasted_iota(jnp.int32, (1, tp), 1)
    valid = col < valid_len
    mask_prev = (col == 0) | (col >= valid_len)
    mask_next = col >= valid_len - 1
    zero = jnp.zeros((), x_ref.dtype)                     # dtype-matched zero
    inv_n = 1.0 / valid_len

    def body(i, carry):
        x = x_ref[i]                                      # (Cip, Tp)
        # Shifted taps via XLU rolls; boundary + padded-tail columns zeroed so
        # the conv accumulator's padded columns are exactly zero.
        x_prev = jnp.where(mask_prev, zero, pltpu.roll(x, 1, 1))
        x_next = jnp.where(mask_next, zero, pltpu.roll(x, tp - 1, 1))
        xs = jnp.concatenate([x_prev, x, x_next], axis=0)  # (3*Cip, Tp)

        # Conv1d(k=3, pad=1, no bias): both GLU halves in ONE MXU matmul.
        acc = jnp.dot(w, xs, preferred_element_type=jnp.float32)  # (2*Chp, Tp)

        par = p_ref[b0 + i].astype(jnp.float32)           # (4, Chp, 1)

        def cin(a, gamma, beta):
            # Padded columns of `a` are exactly zero -> unmasked sum for mean.
            u = jnp.sum(a, axis=-1, keepdims=True) * inv_n
            d = jnp.where(valid, a - u, 0.0)              # single mask, reused
            var = jnp.sum(d * d, axis=-1, keepdims=True) * inv_n
            scale = gamma * jax.lax.rsqrt(var + 1e-8)     # eps matches module
            return d * scale + beta

        y_a = cin(acc[:chp], par[0], par[1])              # free 8-aligned slices
        y_b = cin(acc[chp:], par[2], par[3])
        o_ref[i] = (y_a * jax.nn.sigmoid(y_b)).astype(o_ref.dtype)
        return carry

    jax.lax.fori_loop(0, bblk, body, 0, unroll=True)


def residual_block(x, c, conv_w, gamma_w, gamma_b, beta_w, beta_b,
                   *, block_batch=8, mxu_bf16=True):
    """x: (B, C_in, T), c: (B, S).
    conv_w: (C_out, C_in, 3)  (PyTorch Conv1d weight layout)
    gamma_w/beta_w: (C_out, S), gamma_b/beta_b: (C_out,) (PyTorch Linear layout)
    returns (B, C_out//2, T)."""
    B, C_in, T = x.shape
    C_out = conv_w.shape[0]
    assert C_out % 2 == 0, "GLU needs an even number of channels"
    Ch = C_out // 2

    out_dtype = x.dtype
    mxu_dtype = jnp.bfloat16 if (mxu_bf16 and x.dtype == jnp.float32) else x.dtype

    Cip = _round_up(C_in, 8)        # sublane-align input channels
    Chp = _round_up(Ch, 8)          # sublane-align each GLU half
    Tp = _round_up(T, 128)          # lane-align the length axis
    Bblk = max(1, min(block_batch, B))
    Bp = _round_up(B, Bblk)

    # --- wrapper-side glue (cheap XLA ops) ---------------------------------
    # NOTE: for production shapes choose C_in/Ch multiples of 8 (16 for bf16)
    # and T a multiple of 128 so these pads / the final slice are no-ops.
    xp = jnp.pad(x, ((0, Bp - B), (0, Cip - C_in), (0, Tp - T))).astype(mxu_dtype)

    # (C_out,C_in,3) -> (C_out, 3*Cip); column = tap*Cip + in_ch, matching
    # xs = concat([x_{t-1}, x_t, x_{t+1}]). GLU halves stacked along M.
    w = jnp.transpose(conv_w, (0, 2, 1))
    w = jnp.pad(w, ((0, 0), (0, 0), (0, Cip - C_in))).reshape(C_out, 3 * Cip)
    w_a = jnp.pad(w[:Ch], ((0, Chp - Ch), (0, 0)))
    w_b = jnp.pad(w[Ch:], ((0, Chp - Ch), (0, 0)))
    w_packed = jnp.concatenate([w_a, w_b], axis=0).astype(mxu_dtype)  # (2Chp,3Cip)

    # Hoist the style Linears: one batched matmul; gamma/beta packed in f32.
    gamma = (c @ gamma_w.T + gamma_b).astype(jnp.float32)             # (B, C_out)
    beta = (c @ beta_w.T + beta_b).astype(jnp.float32)
    pad_h = ((0, 0), (0, Chp - Ch))
    params = jnp.stack(
        [jnp.pad(gamma[:, :Ch], pad_h), jnp.pad(beta[:, :Ch], pad_h),
         jnp.pad(gamma[:, Ch:], pad_h), jnp.pad(beta[:, Ch:], pad_h)],
        axis=1)[..., None]
    params = jnp.pad(params, ((0, Bp - B), (0, 0), (0, 0), (0, 0)))   # (Bp,4,Chp,1)

    # TODO(synk): for production-length T on v7x (64 MiB VMEM), add an
    # "arbitrary" T-tile grid axis with a two-pass CIN, plus a second
    # "parallel" channel-tile axis to keep both v7x TensorCores busy at small B.
    kernel = functools.partial(_residual_block_kernel,
                               valid_len=T, chp=Chp, bblk=Bblk)
    out_padded = pl.pallas_call(
        kernel,
        out_shape=jax.ShapeDtypeStruct((Bp, Chp, Tp), out_dtype),
        grid_spec=pltpu.PrefetchScalarGridSpec(
            num_scalar_prefetch=0,
            grid=(Bp // Bblk,),
            in_specs=[
                pl.BlockSpec((Bblk, Cip, Tp), lambda b: (b, 0, 0)),
                pl.BlockSpec((2 * Chp, 3 * Cip), lambda b: (0, 0)),
                pl.BlockSpec((Bp, 4, Chp, 1), lambda b: (0, 0, 0, 0)),  # resident
            ],
            out_specs=pl.BlockSpec((Bblk, Chp, Tp), lambda b: (b, 0, 0)),
        ),
        compiler_params=pltpu.CompilerParams(
            dimension_semantics=("parallel",),
        ),
    )(xp, w_packed, params)

    return out_padded[:B, :Ch, :T]


def residual_block_ref(x, c, conv_w, gamma_w, gamma_b, beta_w, beta_b):
    """Pure-JAX reference mirroring the PyTorch forward."""
    y = jax.lax.conv_general_dilated(
        x, conv_w, window_strides=(1,), padding=((1, 1),),
        dimension_numbers=("NCH", "OIH", "NCH"))
    u = jnp.mean(y, axis=2, keepdims=True)
    var = jnp.mean((y - u) * (y - u), axis=2, keepdims=True)
    std = jnp.sqrt(var + 1e-8)
    gamma = c @ gamma_w.T + gamma_b
    beta = c @ beta_w.T + beta_b
    h = (y - u) / std
    h = h * gamma[:, :, None] + beta[:, :, None]
    half = h.shape[1] // 2
    return h[:, :half] * jax.nn.sigmoid(h[:, half:])


if __name__ == "__main__":
    B, C_in, C_out, T, S = 2, 4, 8, 16, 4   # dim_in=4, dim_out=8, style_num=4

    key = jax.random.PRNGKey(0)
    kx, kc, kw, kg1, kg2, kb1, kb2 = jax.random.split(key, 7)

    x = jax.random.normal(kx, (B, C_in, T), jnp.float32)
    c = jax.random.normal(kc, (B, S), jnp.float32)

    # Deterministic parameter init (shapes match the PyTorch module).
    conv_w = jax.random.normal(kw, (C_out, C_in, 3), jnp.float32) * 0.2
    gamma_w = jax.random.normal(kg1, (C_out, S), jnp.float32) * 0.2
    gamma_b = jax.random.normal(kg2, (C_out,), jnp.float32) * 0.1
    beta_w = jax.random.normal(kb1, (C_out, S), jnp.float32) * 0.2
    beta_b = jax.random.normal(kb2, (C_out,), jnp.float32) * 0.1

    ref = residual_block_ref(x, c, conv_w, gamma_w, gamma_b, beta_w, beta_b)

    # f32 MXU path: tight check against the PyTorch-equivalent reference.
    out_f32 = jax.block_until_ready(
        residual_block(x, c, conv_w, gamma_w, gamma_b, beta_w, beta_b,
                       mxu_bf16=False))
    assert out_f32.shape == (B, C_out // 2, T)
    assert jnp.allclose(out_f32, ref, atol=1e-5, rtol=1e-5), "f32 path mismatch"

    # bf16 MXU path (default; native on v6e/v7x): loose check.
    out_bf16 = jax.block_until_ready(
        residual_block(x, c, conv_w, gamma_w, gamma_b, beta_w, beta_b,
                       mxu_bf16=True))
    assert out_bf16.shape == (B, C_out // 2, T)
    assert jnp.allclose(out_bf16, ref, atol=5e-2, rtol=5e-2), "bf16 path mismatch"

    print("KERNEL_OK")
</pallas_src>

<mosaic_0001>
module attributes {stable_mosaic.version = 11 : i64} {
  func.func @_residual_block_kernel(%arg0: i32, %arg1: memref<2x8x128xf32, #tpu.memory_space<vmem>>, %arg2: memref<16x24xf32, #tpu.memory_space<vmem>>, %arg3: memref<2x4x8x1xf32, #tpu.memory_space<vmem>>, %arg4: memref<2x8x128xf32, #tpu.memory_space<vmem>>) attributes {dimension_semantics = [#tpu.dimension_semantics<parallel>], iteration_bounds = array<i64: 1>, scalar_prefetch = 0 : i64, scratch_operands = 0 : i64, tpu.core_type = #tpu.core_type<tc>, window_params = [{transform_indices = @transform_0, window_bounds = array<i64: 2, 8, 128>}, {pipeline_mode = #tpu.pipeline_mode<synchronous>, transform_indices = @transform_1, window_bounds = array<i64: 16, 24>}, {pipeline_mode = #tpu.pipeline_mode<synchronous>, transform_indices = @transform_2, window_bounds = array<i64: 2, 4, 8, 1>}, {transform_indices = @transform_3, window_bounds = array<i64: 2, 8, 128>}]} {
    %c2_i32 = arith.constant 2 : i32
    %0 = arith.muli %arg0, %c2_i32 : i32
    %c0 = arith.constant 0 : index
    %c0_0 = arith.constant 0 : index
    %1 = vector.load %arg2[%c0, %c0_0] : memref<16x24xf32, #tpu.memory_space<vmem>>, vector<16x24xf32>
    %2 = tpu.iota {dimensions = array<i32: 1>} : vector<1x128xi32>
    %c16_i32 = arith.constant 16 : i32
    %3 = vector.broadcast %c16_i32 : i32 to vector<1x128xi32>
    %4 = arith.cmpi slt, %2, %3 : vector<1x128xi32>
    %c0_i32 = arith.constant 0 : i32
    %5 = vector.broadcast %c0_i32 : i32 to vector<1x128xi32>
    %6 = arith.cmpi eq, %2, %5 : vector<1x128xi32>
    %c16_i32_1 = arith.constant 16 : i32
    %7 = vector.broadcast %c16_i32_1 : i32 to vector<1x128xi32>
    %8 = arith.cmpi sge, %2, %7 : vector<1x128xi32>
    %9 = arith.ori %6, %8 : vector<1x128xi1>
    %c15_i32 = arith.constant 15 : i32
    %10 = vector.broadcast %c15_i32 : i32 to vector<1x128xi32>
    %11 = arith.cmpi sge, %2, %10 : vector<1x128xi32>
    %cst = arith.constant 0.000000e+00 : f32
    %c0_i32_2 = arith.constant 0 : i32
    %12 = arith.index_cast %c0_i32_2 : i32 to index
    %c0_3 = arith.constant 0 : index
    %c0_4 = arith.constant 0 : index
    %13 = vector.load %arg1[%12, %c0_3, %c0_4] : memref<2x8x128xf32, #tpu.memory_space<vmem>>, vector<1x8x128xf32>
    %14 = vector.shape_cast %13 : vector<1x8x128xf32> to vector<8x128xf32>
    %c1_i32 = arith.constant 1 : i32
    %15 = tpu.dynamic_rotate %14 by %c1_i32 dim 1 : vector<8x128xf32>, i32 -> vector<8x128xf32>
    %16 = vector.shape_cast %9 : vector<1x128xi1> to vector<1x128xi1>
    %17 = vector.broadcast %16 : vector<1x128xi1> to vector<8x128xi1>
    %18 = vector.broadcast %cst : f32 to vector<8x128xf32>
    %19 = arith.select %17, %18, %15 : vector<8x128xi1>, vector<8x128xf32>
    %c127_i32 = arith.constant 127 : i32
    %20 = tpu.dynamic_rotate %14 by %c127_i32 dim 1 : vector<8x128xf32>, i32 -> vector<8x128xf32>
    %21 = vector.shape_cast %11 : vector<1x128xi1> to vector<1x128xi1>
    %22 = vector.broadcast %21 : vector<1x128xi1> to vector<8x128xi1>
    %23 = vector.broadcast %cst : f32 to vector<8x128xf32>
    %24 = arith.select %22, %23, %20 : vector<8x128xi1>, vector<8x128xf32>
    %25 = tpu.concatenate %19, %14, %24 in 0 : vector<8x128xf32>, vector<8x128xf32>, vector<8x128xf32> -> vector<24x128xf32>
    %cst_5 = arith.constant dense<0.000000e+00> : vector<16x128xf32>
    %26 = tpu.matmul %1, %25, %cst_5 {dimension_numbers = #tpu.dot_dimension_numbers<[1], [0], [0], [1], [0, 0, 1, 1], [], []>} : vector<16x24xf32>, vector<24x128xf32>, vector<16x128xf32> -> vector<16x128xf32>
    %27 = arith.addi %0, %c0_i32_2 : i32
    %28 = arith.index_cast %27 : i32 to index
    %c0_6 = arith.constant 0 : index
    %c0_7 = arith.constant 0 : index
    %c0_8 = arith.constant 0 : index
    %29 = vector.load %arg3[%28, %c0_6, %c0_7, %c0_8] : memref<2x4x8x1xf32, #tpu.memory_space<vmem>>, vector<1x4x8x1xf32>
    %30 = vector.shape_cast %29 : vector<1x4x8x1xf32> to vector<4x8x1xf32>
    %31 = vector.extract_strided_slice %26 {offsets = [0, 0], sizes = [8, 128], strides = [1, 1]} : vector<16x128xf32> to vector<8x128xf32>
    %32 = vector.extract_strided_slice %30 {offsets = [0, 0, 0], sizes = [1, 8, 1], strides = [1, 1, 1]} : vector<4x8x1xf32> to vector<1x8x1xf32>
    %33 = vector.shape_cast %32 : vector<1x8x1xf32> to vector<8x1xf32>
    %34 = vector.extract_strided_slice %30 {offsets = [1, 0, 0], sizes = [1, 8, 1], strides = [1, 1, 1]} : vector<4x8x1xf32> to vector<1x8x1xf32>
    %35 = vector.shape_cast %34 : vector<1x8x1xf32> to vector<8x1xf32>
    %cst_9 = arith.constant dense<0.000000e+00> : vector<8xf32>
    %36 = vector.multi_reduction <add>, %31, %cst_9 [1] : vector<8x128xf32> to vector<8xf32>
    %37 = vector.shape_cast %36 : vector<8xf32> to vector<8x1xf32>
    %cst_10 = arith.constant 6.250000e-02 : f32
    %38 = vector.broadcast %cst_10 : f32 to vector<8x1xf32>
    %39 = arith.mulf %37, %38 : vector<8x1xf32>
    %40 = vector.broadcast %39 : vector<8x1xf32> to vector<8x128xf32>
    %41 = arith.subf %31, %40 : vector<8x128xf32>
    %cst_11 = arith.constant 0.000000e+00 : f32
    %42 = vector.shape_cast %4 : vector<1x128xi1> to vector<1x128xi1>
    %43 = vector.broadcast %42 : vector<1x128xi1> to vector<8x128xi1>
    %44 = vector.broadcast %cst_11 : f32 to vector<8x128xf32>
    %45 = arith.select %43, %41, %44 : vector<8x128xi1>, vector<8x128xf32>
    %46 = arith.mulf %45, %45 : vector<8x128xf32>
    %cst_12 = arith.constant dense<0.000000e+00> : vector<8xf32>
    %47 = vector.multi_reduction <add>, %46, %cst_12 [1] : vector<8x128xf32> to vector<8xf32>
    %48 = vector.shape_cast %47 : vector<8xf32> to vector<8x1xf32>
    %cst_13 = arith.constant 6.250000e-02 : f32
    %49 = vector.broadcast %cst_13 : f32 to vector<8x1xf32>
    %50 = arith.mulf %48, %49 : vector<8x1xf32>
    %cst_14 = arith.constant 9.99999993E-9 : f32
    %51 = vector.broadcast %cst_14 : f32 to vector<8x1xf32>
    %52 = arith.addf %50, %51 : vector<8x1xf32>
    %53 = math.rsqrt %52 : vector<8x1xf32>
    %54 = arith.mulf %33, %53 : vector<8x1xf32>
    %55 = vector.broadcast %54 : vector<8x1xf32> to vector<8x128xf32>
    %56 = arith.mulf %45, %55 : vector<8x128xf32>
    %57 = vector.broadcast %35 : vector<8x1xf32> to vector<8x128xf32>
    %58 = arith.addf %56, %57 : vector<8x128xf32>
    %59 = vector.extract_strided_slice %26 {offsets = [8, 0], sizes = [8, 128], strides = [1, 1]} : vector<16x128xf32> to vector<8x128xf32>
    %60 = vector.extract_strided_slice %30 {offsets = [2, 0, 0], sizes = [1, 8, 1], strides = [1, 1, 1]} : vector<4x8x1xf32> to vector<1x8x1xf32>
    %61 = vector.shape_cast %60 : vector<1x8x1xf32> to vector<8x1xf32>
    %62 = vector.extract_strided_slice %30 {offsets = [3, 0, 0], sizes = [1, 8, 1], strides = [1, 1, 1]} : vector<4x8x1xf32> to vector<1x8x1xf32>
    %63 = vector.shape_cast %62 : vector<1x8x1xf32> to vector<8x1xf32>
    %cst_15 = arith.constant dense<0.000000e+00> : vector<8xf32>
    %64 = vector.multi_reduction <add>, %59, %cst_15 [1] : vector<8x128xf32> to vector<8xf32>
    %65 = vector.shape_cast %64 : vector<8xf32> to vector<8x1xf32>
    %cst_16 = arith.constant 6.250000e-02 : f32
    %66 = vector.broadcast %cst_16 : f32 to vector<8x1xf32>
    %67 = arith.mulf %65, %66 : vector<8x1xf32>
    %68 = vector.broadcast %67 : vector<8x1xf32> to vector<8x128xf32>
    %69 = arith.subf %59, %68 : vector<8x128xf32>
    %cst_17 = arith.constant 0.000000e+00 : f32
    %70 = vector.shape_cast %4 : vector<1x128xi1> to vector<1x128xi1>
    %71 = vector.broadcast %70 : vector<1x128xi1> to vector<8x128xi1>
    %72 = vector.broadcast %cst_17 : f32 to vector<8x128xf32>
    %73 = arith.select %71, %69, %72 : vector<8x128xi1>, vector<8x128xf32>
    %74 = arith.mulf %73, %73 : vector<8x128xf32>
    %cst_18 = arith.constant dense<0.000000e+00> : vector<8xf32>
    %75 = vector.multi_reduction <add>, %74, %cst_18 [1] : vector<8x128xf32> to vector<8xf32>
    %76 = vector.shape_cast %75 : vector<8xf32> to vector<8x1xf32>
    %cst_19 = arith.constant 6.250000e-02 : f32
    %77 = vector.broadcast %cst_19 : f32 to vector<8x1xf32>
    %78 = arith.mulf %76, %77 : vector<8x1xf32>
    %cst_20 = arith.constant 9.99999993E-9 : f32
    %79 = vector.broadcast %cst_20 : f32 to vector<8x1xf32>
    %80 = arith.addf %78, %79 : vector<8x1xf32>
    %81 = math.rsqrt %80 : vector<8x1xf32>
    %82 = arith.mulf %61, %81 : vector<8x1xf32>
    %83 = vector.broadcast %82 : vector<8x1xf32> to vector<8x128xf32>
    %84 = arith.mulf %73, %83 : vector<8x128xf32>
    %85 = vector.broadcast %63 : vector<8x1xf32> to vector<8x128xf32>
    %86 = arith.addf %84, %85 : vector<8x128xf32>
    %87 = arith.negf %86 : vector<8x128xf32>
    %88 = math.exp %87 : vector<8x128xf32>
    %cst_21 = arith.constant 1.000000e+00 : f32
    %89 = vector.broadcast %cst_21 : f32 to vector<8x128xf32>
    %90 = arith.addf %89, %88 : vector<8x128xf32>
    %91 = arith.divf %89, %90 : vector<8x128xf32>
    %92 = arith.mulf %58, %91 : vector<8x128xf32>
    %93 = arith.index_cast %c0_i32_2 : i32 to index
    %c0_22 = arith.constant 0 : index
    %c0_23 = arith.constant 0 : index
    %94 = vector.load %arg4[%93, %c0_22, %c0_23] : memref<2x8x128xf32, #tpu.memory_space<vmem>>, vector<1x8x128xf32>
    %95 = vector.shape_cast %94 : vector<1x8x128xf32> to vector<8x128xf32>
    %96 = vector.shape_cast %92 : vector<8x128xf32> to vector<1x8x128xf32>
    tpu.vector_store %arg4[%93, %c0_22, %c0_23], %96 {strides = array<i32>} : memref<2x8x128xf32, #tpu.memory_space<vmem>>, vector<1x8x128xf32>,
    %c1_i32_24 = arith.constant 1 : i32
    %97 = arith.index_cast %c1_i32_24 : i32 to index
    %c0_25 = arith.constant 0 : index
    %c0_26 = arith.constant 0 : index
    %98 = vector.load %arg1[%97, %c0_25, %c0_26] : memref<2x8x128xf32, #tpu.memory_space<vmem>>, vector<1x8x128xf32>
    %99 = vector.shape_cast %98 : vector<1x8x128xf32> to vector<8x128xf32>
    %c1_i32_27 = arith.constant 1 : i32
    %100 = tpu.dynamic_rotate %99 by %c1_i32_27 dim 1 : vector<8x128xf32>, i32 -> vector<8x128xf32>
    %101 = vector.shape_cast %9 : vector<1x128xi1> to vector<1x128xi1>
    %102 = vector.broadcast %101 : vector<1x128xi1> to vector<8x128xi1>
    %103 = vector.broadcast %cst : f32 to vector<8x128xf32>
    %104 = arith.select %102, %103, %100 : vector<8x128xi1>, vector<8x128xf32>
    %c127_i32_28 = arith.constant 127 : i32
    %105 = tpu.dynamic_rotate %99 by %c127_i32_28 dim 1 : vector<8x128xf32>, i32 -> vector<8x128xf32>
    %106 = vector.shape_cast %11 : vector<1x128xi1> to vector<1x128xi1>
    %107 = vector.broadcast %106 : vector<1x128xi1> to vector<8x128xi1>
    %108 = vector.broadcast %cst : f32 to vector<8x128xf32>
    %109 = arith.select %107, %108, %105 : vector<8x128xi1>, vector<8x128xf32>
    %110 = tpu.concatenate %104, %99, %109 in 0 : vector<8x128xf32>, vector<8x128xf32>, vector<8x128xf32> -> vector<24x128xf32>
    %cst_29 = arith.constant dense<0.000000e+00> : vector<16x128xf32>
    %111 = tpu.matmul %1, %110, %cst_29 {dimension_numbers = #tpu.dot_dimension_numbers<[1], [0], [0], [1], [0, 0, 1, 1], [], []>} : vector<16x24xf32>, vector<24x128xf32>, vector<16x128xf32> -> vector<16x128xf32>
    %112 = arith.addi %0, %c1_i32_24 : i32
    %113 = arith.index_cast %112 : i32 to index
    %c0_30 = arith.constant 0 : index
    %c0_31 = arith.constant 0 : index
    %c0_32 = arith.constant 0 : index
    %114 = vector.load %arg3[%113, %c0_30, %c0_31, %c0_32] : memref<2x4x8x1xf32, #tpu.memory_space<vmem>>, vector<1x4x8x1xf32>
    %115 = vector.shape_cast %114 : vector<1x4x8x1xf32> to vector<4x8x1xf32>
    %116 = vector.extract_strided_slice %111 {offsets = [0, 0], sizes = [8, 128], strides = [1, 1]} : vector<16x128xf32> to vector<8x128xf32>
    %117 = vector.extract_strided_slice %115 {offsets = [0, 0, 0], sizes = [1, 8, 1], strides = [1, 1, 1]} : vector<4x8x1xf32> to vector<1x8x1xf32>
    %118 = vector.shape_cast %117 : vector<1x8x1xf32> to vector<8x1xf32>
    %119 = vector.extract_strided_slice %115 {offsets = [1, 0, 0], sizes = [1, 8, 1], strides = [1, 1, 1]} : vector<4x8x1xf32> to vector<1x8x1xf32>
    %120 = vector.shape_cast %119 : vector<1x8x1xf32> to vector<8x1xf32>
    %cst_33 = arith.constant dense<0.000000e+00> : vector<8xf32>
    %121 = vector.multi_reduction <add>, %116, %cst_33 [1] : vector<8x128xf32> to vector<8xf32>
    %122 = vector.shape_cast %121 : vector<8xf32> to vector<8x1xf32>
    %cst_34 = arith.constant 6.250000e-02 : f32
    %123 = vector.broadcast %cst_34 : f32 to vector<8x1xf32>
    %124 = arith.mulf %122, %123 : vector<8x1xf32>
    %125 = vector.broadcast %124 : vector<8x1xf32> to vector<8x128xf32>
    %126 = arith.subf %116, %125 : vector<8x128xf32>
    %cst_35 = arith.constant 0.000000e+00 : f32
    %127 = vector.shape_cast %4 : vector<1x128xi1> to vector<1x128xi1>
    %128 = vector.broadcast %127 : vector<1x128xi1> to vector<8x128xi1>
    %129 = vector.broadcast %cst_35 : f32 to vector<8x128xf32>
    %130 = arith.select %128, %126, %129 : vector<8x128xi1>, vector<8x128xf32>
    %131 = arith.mulf %130, %130 : vector<8x128xf32>
    %cst_36 = arith.constant dense<0.000000e+00> : vector<8xf32>
    %132 = vector.multi_reduction <add>, %131, %cst_36 [1] : vector<8x128xf32> to vector<8xf32>
    %133 = vector.shape_cast %132 : vector<8xf32> to vector<8x1xf32>
    %cst_37 = arith.constant 6.250000e-02 : f32
    %134 = vector.broadcast %cst_37 : f32 to vector<8x1xf32>
    %135 = arith.mulf %133, %134 : vector<8x1xf32>
    %cst_38 = arith.constant 9.99999993E-9 : f32
    %136 = vector.broadcast %cst_38 : f32 to vector<8x1xf32>
    %137 = arith.addf %135, %136 : vector<8x1xf32>
    %138 = math.rsqrt %137 : vector<8x1xf32>
    %139 = arith.mulf %118, %138 : vector<8x1xf32>
    %140 = vector.broadcast %139 : vector<8x1xf32> to vector<8x128xf32>
    %141 = arith.mulf %130, %140 : vector<8x128xf32>
    %142 = vector.broadcast %120 : vector<8x1xf32> to vector<8x128xf32>
    %143 = arith.addf %141, %142 : vector<8x128xf32>
    %144 = vector.extract_strided_slice %111 {offsets = [8, 0], sizes = [8, 128], strides = [1, 1]} : vector<16x128xf32> to vector<8x128xf32>
    %145 = vector.extract_strided_slice %115 {offsets = [2, 0, 0], sizes = [1, 8, 1], strides = [1, 1, 1]} : vector<4x8x1xf32> to vector<1x8x1xf32>
    %146 = vector.shape_cast %145 : vector<1x8x1xf32> to vector<8x1xf32>
    %147 = vector.extract_strided_slice %115 {offsets = [3, 0, 0], sizes = [1, 8, 1], strides = [1, 1, 1]} : vector<4x8x1xf32> to vector<1x8x1xf32>
    %148 = vector.shape_cast %147 : vector<1x8x1xf32> to vector<8x1xf32>
    %cst_39 = arith.constant dense<0.000000e+00> : vector<8xf32>
    %149 = vector.multi_reduction <add>, %144, %cst_39 [1] : vector<8x128xf32> to vector<8xf32>
    %150 = vector.shape_cast %149 : vector<8xf32> to vector<8x1xf32>
    %cst_40 = arith.constant 6.250000e-02 : f32
    %151 = vector.broadcast %cst_40 : f32 to vector<8x1xf32>
    %152 = arith.mulf %150, %151 : vector<8x1xf32>
    %153 = vector.broadcast %152 : vector<8x1xf32> to vector<8x128xf32>
    %154 = arith.subf %144, %153 : vector<8x128xf32>
    %cst_41 = arith.constant 0.000000e+00 : f32
    %155 = vector.shape_cast %4 : vector<1x128xi1> to vector<1x128xi1>
    %156 = vector.broadcast %155 : vector<1x128xi1> to vector<8x128xi1>
    %157 = vector.broadcast %cst_41 : f32 to vector<8x128xf32>
    %158 = arith.select %156, %154, %157 : vector<8x128xi1>, vector<8x128xf32>
    %159 = arith.mulf %158, %158 : vector<8x128xf32>
    %cst_42 = arith.constant dense<0.000000e+00> : vector<8xf32>
    %160 = vector.multi_reduction <add>, %159, %cst_42 [1] : vector<8x128xf32> to vector<8xf32>
    %161 = vector.shape_cast %160 : vector<8xf32> to vector<8x1xf32>
    %cst_43 = arith.constant 6.250000e-02 : f32
    %162 = vector.broadcast %cst_43 : f32 to vector<8x1xf32>
    %163 = arith.mulf %161, %162 : vector<8x1xf32>
    %cst_44 = arith.constant 9.99999993E-9 : f32
    %164 = vector.broadcast %cst_44 : f32 to vector<8x1xf32>
    %165 = arith.addf %163, %164 : vector<8x1xf32>
    %166 = math.rsqrt %165 : vector<8x1xf32>
    %167 = arith.mulf %146, %166 : vector<8x1xf32>
    %168 = vector.broadcast %167 : vector<8x1xf32> to vector<8x128xf32>
    %169 = arith.mulf %158, %168 : vector<8x128xf32>
    %170 = vector.broadcast %148 : vector<8x1xf32> to vector<8x128xf32>
    %171 = arith.addf %169, %170 : vector<8x128xf32>
    %172 = arith.negf %171 : vector<8x128xf32>
    %173 = math.exp %172 : vector<8x128xf32>
    %cst_45 = arith.constant 1.000000e+00 : f32
    %174 = vector.broadcast %cst_45 : f32 to vector<8x128xf32>
    %175 = arith.addf %174, %173 : vector<8x128xf32>
    %176 = arith.divf %174, %175 : vector<8x128xf32>
    %177 = arith.mulf %143, %176 : vector<8x128xf32>
    %178 = arith.index_cast %c1_i32_24 : i32 to index
    %c0_46 = arith.constant 0 : index
    %c0_47 = arith.constant 0 : index
    %179 = vector.load %arg4[%178, %c0_46, %c0_47] : memref<2x8x128xf32, #tpu.memory_space<vmem>>, vector<1x8x128xf32>
    %180 = vector.shape_cast %179 : vector<1x8x128xf32> to vector<8x128xf32>
    %181 = vector.shape_cast %177 : vector<8x128xf32> to vector<1x8x128xf32>
    tpu.vector_store %arg4[%178, %c0_46, %c0_47], %181 {strides = array<i32>} : memref<2x8x128xf32, #tpu.memory_space<vmem>>, vector<1x8x128xf32>,
    %c2_i32_48 = arith.constant 2 : i32
    return
  }
  func.func @transform_0(%arg0: i32) -> (i32, i32, i32) {
    %c0_i32 = arith.constant 0 : i32
    %c0_i32_0 = arith.constant 0 : i32
    %c0_i32_1 = arith.constant 0 : i32
    return %arg0, %c0_i32, %c0_i32_0 : i32, i32, i32
  }
  func.func @transform_1(%arg0: i32) -> (i32, i32) {
    %c0_i32 = arith.constant 0 : i32
    %c0_i32_0 = arith.constant 0 : i32
    %c0_i32_1 = arith.constant 0 : i32
    return %c0_i32, %c0_i32_0 : i32, i32
  }
  func.func @transform_2(%arg0: i32) -> (i32, i32, i32, i32) {
    %c0_i32 = arith.constant 0 : i32
    %c0_i32_0 = arith.constant 0 : i32
    %c0_i32_1 = arith.constant 0 : i32
    %c0_i32_2 = arith.constant 0 : i32
    %c0_i32_3 = arith.constant 0 : i32
    return %c0_i32, %c0_i32_0, %c0_i32_1, %c0_i32_2 : i32, i32, i32, i32
  }
  func.func @transform_3(%arg0: i32) -> (i32, i32, i32) {
    %c0_i32 = arith.constant 0 : i32
    %c0_i32_0 = arith.constant 0 : i32
    %c0_i32_1 = arith.constant 0 : i32
    return %arg0, %c0_i32, %c0_i32_0 : i32, i32, i32
  }
}

</mosaic_0001>

<bundles_post_ra>
// kernel: tpu_custom_call.1
= control target key start
LH: loop header
LB: loop body
LE: loop exit
PB: predicated region body
PF: predicated region fallthrough
CT: control target
= control target key end

     0   :  { %s494_s0 = inlined_call_operand.vmem [shape: f32[2,8,128], index: 0, kind: input, shape index: {}]   ;;  %s495_s1 = inlined_call_operand.vmem [shape: f32[16,24], index: 1, kind: input, shape index: {}]   ;;  %s496_s2 = inlined_call_operand.vmem [shape: f32[2,4,8,1], index: 2, kind: input, shape index: {}]   ;;  %s497_s3 = inlined_call_operand.hbm [shape: f32[2,8,128], index: 3, kind: output, shape index: {}]  }
   0x1   :  { %v25_v0 = vld [vmem:[%s494_s0] sm:$0xff] }
   0x2   :  { %8 = vsyncpa [#allocation3], 0  ;;  %s383_s14 = smov 127   ;;  %s384_s15 = smov 1   ;;  %v313_v1 = vld [vmem:[%s494_s0 + $0x8] sm:$0xff]  ;;  %v18_v2 = vlaneseq  ;;  %v16_v7 = vld [vmem:[%s495_s1] sm:$0xff] }
   0x3   :  { %31 = vrot.lane.b32.xlu0 %v25_v0, %s383_s14  ;;  %26 = vrot.lane.b32.xlu1 %v25_v0, %s384_s15  ;;  %vm36_vm5 = vcmask 195584   ;;  %v17_v8 = vld [vmem:[%s495_s1 + $0x8] sm:$0xff]  ;;  %v385_v35 = vmov 0   ;;  %v320_v58 = vld [vmem:[%s496_s2 + $0x20] sm:$0xff]  ;;  %s293_s12 = sshll.u32 %s497_s3, 4  ;;  %s387_s13 = smov 128   ;;  %s294_s12 = int_to_ptr.hbm [resolvable:$true] %s293_s12 }
   0x4   :  { %v19_v3 = vand.u32 127, %v18_v2  ;;  %338 = vset.pattern.permute.xlu1 %v385_v35  ;;  %v69_v36 = vld [vmem:[%s496_s2 + $0x8] sm:$0xff]  ;;  %340 = vset.pattern.permute.xlu0 %v385_v35  ;;  %v322_v4 = vld [vmem:[%s496_s2 + $0x30] sm:$0xff] }
   0x5   :  { %339 = vset.pattern.permute.xlu2 %v385_v35 }
   0x6   :  { %vm21_vm0 = vcmp.eq.s32.totalorder %v19_v3, 0  ;;  %vm22_vm1 = vcmp.ge.s32.totalorder %v19_v3, 16  ;;  %vm325_vm2 = vcmp.lt.s32.totalorder %v19_v3, 15  ;;  %vm20_vm6 = vcmp.lt.s32.totalorder %v19_v3, 16 }
   0x7   :  { %vm415_vm3 = vmor %vm21_vm0, %vm22_vm1 }
   0x8   :  { %vm308_vm4 = vmneg %vm415_vm3 }
   0xb   :  { %166 = vrot.lane.b32.xlu0 %v313_v1, %s383_s14  ;;  %163 = vrot.lane.b32.xlu1 %v313_v1, %s384_s15  ;;  %s388_s14 = smov 8  }
  0x75   :  { %v32_v5 = vpop.permute.xlu0 %31  ;;  %v27_v6 = vpop.permute.xlu1 %26 }
  0x76   :  { %307 = vmatpush.msk.msra.mxu0 %vm325_vm2, %v32_v5  ;;  %326 = vmatpush.msk.msra.mxu2 %vm325_vm2, %v32_v5 }
  0x78   :  { %57 = vmatpush.msra.mxu0 %v25_v0  ;;  %327 = vmatpush.msra.mxu2 %v25_v0 }
  0x7a   :  { %309 = vmatpush.msk.msra.mxu0 %vm308_vm4, %v27_v6  ;;  %328 = vmatpush.msk.msra.mxu2 %vm308_vm4, %v27_v6 }
  0x7b   :  { %310 = vmatmul.msk.f32.vlgmr.msra.gmra.mxu0 %vm36_vm5, %v16_v7  ;;  %311 = vmatmul.msk.f32.vlgmr.msra.gmra.mxu2 %vm36_vm5, %v17_v8 }
  0x7d   :  { %v167_v9 = vpop.permute.xlu0 %166  ;;  %v164_v10 = vpop.permute.xlu1 %163 }
  0x7e   :  { %315 = vmatpush.msk.msra.mxu1 %vm325_vm2, %v167_v9  ;;  %329 = vmatpush.msk.msra.mxu3 %vm325_vm2, %v167_v9 }
  0x80   :  { %183 = vmatpush.msra.mxu1 %v313_v1  ;;  %330 = vmatpush.msra.mxu3 %v313_v1 }
  0x82   :  { %317 = vmatpush.msk.msra.mxu1 %vm308_vm4, %v164_v10  ;;  %331 = vmatpush.msk.msra.mxu3 %vm308_vm4, %v164_v10 }
  0x83   :  { %318 = vmatmul.msk.f32.vlgmr.msra.gmra.mxu1 %vm36_vm5, %v16_v7  ;;  %319 = vmatmul.msk.f32.vlgmr.msra.gmra.mxu3 %vm36_vm5, %v17_v8 }
  0xf8   :  { %v60_v11 = vpop.f32.mrf.mxu0 }
  0xf9   :  { %72 = vadd.xlane.f32.xlu0 %v60_v11 }
  0xfe   :  { %v63_v12 = vpop.f32.mrf.mxu2 }
  0xff   :  { %107 = vadd.xlane.f32.xlu2 %v63_v12 }
 0x100   :  { %v186_v13 = vpop.f32.mrf.mxu1 }
 0x101   :  { %199 = vadd.xlane.f32.xlu1 %v186_v13 }
 0x106   :  { %v189_v14 = vpop.f32.mrf.mxu3 }
 0x107   :  { %232 = vadd.xlane.f32.xlu2 %v189_v14 }
 0x11a   :  { %103 = vperm.xlu1 %338, %v69_v36  }
 0x16c   :  { %v73_v24 = vpop.xlane.xlu0 %72 }
 0x16d   :  { %v74_v28 = vmul.f32 0.0625, %v73_v24  ;;  %v323_v24 = vld [vmem:[%s496_s2 + $0x38] sm:$0xff] }
 0x16f   :  { %v75_v32 = vsub.f32 %v60_v11, %v74_v28 }
 0x171   :  { %v459_v33 = vsel %vm20_vm6, %v75_v32, 0.0 }
 0x172   :  { %v108_v15 = vpop.xlane.xlu2 %107  ;;  %v79_v34 = vmul.f32 %v459_v33, %v459_v33 }
 0x173   :  { %v109_v16 = vmul.f32 0.0625, %v108_v15 }
 0x174   :  { %v200_v17 = vpop.xlane.xlu1 %199 }
 0x175   :  { %v110_v18 = vsub.f32 %v63_v12, %v109_v16  ;;  %v201_v19 = vmul.f32 0.0625, %v200_v17 }
 0x177   :  { %v202_v20 = vsub.f32 %v186_v13, %v201_v19  ;;  %v444_v21 = vsel %vm20_vm6, %v110_v18, 0.0  ;;  %v68_v13 = vld [vmem:[%s496_s2] sm:$0xff]  ;;  %v70_v18 = vld [vmem:[%s496_s2 + $0x10] sm:$0xff] }
 0x178   :  { %v112_v22 = vmul.f32 %v444_v21, %v444_v21 }
 0x179   :  { %v449_v23 = vsel %vm20_vm6, %v202_v20, 0.0 }
 0x17a   :  { %113 = vadd.xlane.f32.xlu2 %v112_v22  ;;  %v233_v25 = vpop.xlane.xlu2 %232  ;;  %v204_v26 = vmul.f32 %v449_v23, %v449_v23  ;;  %v71_v22 = vld [vmem:[%s496_s2 + $0x18] sm:$0xff] }
 0x17b   :  { %v234_v27 = vmul.f32 0.0625, %v233_v25  ;;  %v321_v25 = vld [vmem:[%s496_s2 + $0x28] sm:$0xff]  ;;  %s386_s2 = smov [#allocation2]  }
 0x17c   :  { %205 = vadd.xlane.f32.xlu0 %v204_v26  ;;  %s291_s9 = sshll.u32 %s386_s2, 4  ;;  %s292_s9 = int_to_ptr.vmem [resolvable:$true] %s291_s9 }
 0x17d   :  { %v235_v29 = vsub.f32 %v189_v14, %v234_v27 }
 0x17f   :  { %v454_v30 = vsel %vm20_vm6, %v235_v29, 0.0 }
 0x180   :  { %v237_v31 = vmul.f32 %v454_v30, %v454_v30 }
 0x182   :  { %238 = vadd.xlane.f32.xlu2 %v237_v31 }
 0x18a   :  { %80 = vadd.xlane.f32.xlu2 %v79_v34 }
 0x1ed   :  { %v114_v37 = vpop.xlane.xlu2 %113 }
 0x1ee   :  { %v115_v41 = vmul.f32 0.0625, %v114_v37 }
 0x1ef   :  { %v206_v38 = vpop.xlane.xlu0 %205 }
 0x1f0   :  { %v207_v39 = vmul.f32 0.0625, %v206_v38  ;;  %v116_v44 = vadd.f32 1e-08, %v115_v41 }
 0x1f2   :  { %v208_v40 = vadd.f32 1e-08, %v207_v39  ;;  %vm123_vm1 = vweird.f32 %v116_v44 }
 0x1f4   :  { %341 = vrsqrt.f32 %v208_v40  ;;  %vm215_vm8 = vweird.f32 %v208_v40 }
 0x1f5   :  { %v239_v42 = vpop.xlane.xlu2 %238 }
 0x1f6   :  { %v240_v43 = vmul.f32 0.0625, %v239_v42 }
 0x1f8   :  { %v241_v45 = vadd.f32 1e-08, %v240_v43 }
 0x1fa   :  { %v342_v46 = vpop.eup %341  ;;  %343 = vrsqrt.f32 %v241_v45  ;;  %vm248_vm11 = vweird.f32 %v241_v45 }
 0x1fb   :  { %v210_v47 = vmul.f32 %v342_v46, %v208_v40  ;;  %345 = vrsqrt.f32 %v116_v44  ;;  %vm216_vm7 = vweird.f32 %v342_v46 }
 0x1fc   :  { %vm217_vm9 = vmor %vm215_vm8, %vm216_vm7 }
 0x1fd   :  { %v211_v48 = vmul.f32 %v342_v46, %v210_v47  ;;  %v81_v49 = vpop.xlane.xlu2 %80 }
 0x1fe   :  { %v82_v50 = vmul.f32 0.0625, %v81_v49 }
 0x1ff   :  { %v212_v51 = vmul.f32 0.5, %v211_v48 }
 0x200   :  { %v344_v52 = vpop.eup %343  ;;  %v83_v53 = vadd.f32 1e-08, %v82_v50 }
 0x201   :  { %v213_v54 = vsub.f32 1.5, %v212_v51  ;;  %v243_v55 = vmul.f32 %v344_v52, %v241_v45  ;;  %v346_v56 = vpop.eup %345  ;;  %vm249_vm10 = vweird.f32 %v344_v52  ;;  %v104_v45 = vpop.permute.xlu1 %103 }
 0x202   :  { %347 = vrsqrt.f32 %v83_v53  ;;  %v118_v60 = vmul.f32 %v346_v56, %v116_v44  ;;  %vm250_vm12 = vmor %vm248_vm11, %vm249_vm10  ;;  %vm90_vm14 = vweird.f32 %v83_v53  ;;  %vm124_vm0 = vweird.f32 %v346_v56 }
 0x203   :  { %v244_v57 = vmul.f32 %v344_v52, %v243_v55  ;;  %v214_v59 = vmul.f32 %v342_v46, %v213_v54  ;;  %vm125_vm2 = vmor %vm123_vm1, %vm124_vm0 }
 0x204   :  { %v119_v2 = vmul.f32 %v346_v56, %v118_v60 }
 0x205   :  { %v245_v61 = vmul.f32 0.5, %v244_v57  ;;  %v218_v62 = vsel %vm217_vm9, %v342_v46, %v214_v59 }
 0x206   :  { %v219_v63 = vmul.f32 %v320_v58, %v218_v62  ;;  %v120_v9 = vmul.f32 0.5, %v119_v2 }
 0x207   :  { %v246_v0 = vsub.f32 1.5, %v245_v61 }
 0x208   :  { %v348_v1 = vpop.eup %347  ;;  %222 = vperm.xlu1 %338, %v219_v63   ;;  %v121_v12 = vsub.f32 1.5, %v120_v9 }
 0x209   :  { %v85_v3 = vmul.f32 %v348_v1, %v83_v53  ;;  %v247_v5 = vmul.f32 %v344_v52, %v246_v0  ;;  %vm91_vm13 = vweird.f32 %v348_v1 }
 0x20a   :  { %vm92_vm15 = vmor %vm90_vm14, %vm91_vm13  ;;  %v122_v17 = vmul.f32 %v346_v56, %v121_v12 }
 0x20b   :  { %v86_v6 = vmul.f32 %v348_v1, %v85_v3  ;;  %v251_v7 = vsel %vm250_vm12, %v344_v52, %v247_v5 }
 0x20c   :  { %v252_v8 = vmul.f32 %v322_v4, %v251_v7  ;;  %v126_v19 = vsel %vm125_vm2, %v346_v56, %v122_v17 }
 0x20d   :  { %v87_v10 = vmul.f32 0.5, %v86_v6  ;;  %v127_v20 = vmul.f32 %v126_v19, %v70_v18 }
 0x20e   :  { %255 = vperm.xlu0 %340, %v252_v8  }
 0x20f   :  { %v88_v11 = vsub.f32 1.5, %v87_v10 }
 0x211   :  { %v89_v14 = vmul.f32 %v348_v1, %v88_v11 }
 0x213   :  { %v93_v15 = vsel %vm92_vm15, %v348_v1, %v89_v14 }
 0x214   :  { %v94_v16 = vmul.f32 %v93_v15, %v68_v13 }
 0x216   :  { %97 = vperm.xlu2 %339, %v94_v16  }
 0x21e   :  { %130 = vperm.xlu2 %339, %v127_v20  }
 0x226   :  { %136 = vperm.xlu2 %339, %v71_v22  }
 0x22e   :  { %261 = vperm.xlu2 %339, %v323_v24  }
 0x236   :  { %228 = vperm.xlu2 %339, %v321_v25  }
 0x270   :  { %v98_v26 = vpop.permute.xlu2 %97 }
 0x271   :  { %v100_v47 = vmul.f32 %v98_v26, %v459_v33 }
 0x273   :  { %v106_v52 = vadd.f32 %v104_v45, %v100_v47 }
 0x278   :  { %v131_v27 = vpop.permute.xlu2 %130 }
 0x279   :  { %v133_v28 = vmul.f32 %v131_v27, %v444_v21 }
 0x27a   :  { %v223_v58 = vpop.permute.xlu1 %222 }
 0x27b   :  { %v225_v62 = vmul.f32 %v223_v58, %v449_v23 }
 0x280   :  { %v137_v29 = vpop.permute.xlu2 %136  ;;  %v256_v34 = vpop.permute.xlu0 %255 }
 0x281   :  { %v139_v31 = vadd.f32 %v137_v29, %v133_v28  ;;  %v258_v35 = vmul.f32 %v256_v34, %v454_v30 }
 0x283   :  { %v312_v32 = vmul.f32 -1.442695, %v139_v31 }
 0x285   :  { %349 = vpow2.f32 %v312_v32 }
 0x288   :  { %v262_v36 = vpop.permute.xlu2 %261 }
 0x289   :  { %v264_v37 = vadd.f32 %v262_v36, %v258_v35 }
 0x28b   :  { %v350_v38 = vpop.eup %349  ;;  %v324_v39 = vmul.f32 -1.442695, %v264_v37 }
 0x28c   :  { %v143_v40 = vadd.f32 1.0, %v350_v38 }
 0x28d   :  { %351 = vpow2.f32 %v324_v39 }
 0x28e   :  { %353 = vrcp.f32 %v143_v40  ;;  %v155_v46 = vand.u32 2147483648, %v143_v40  ;;  %v153_v30 = vand.u32 2147483647, %v143_v40  ;;  %vm149_vm4 = vweird.f32 %v143_v40 }
 0x290   :  { %v156_v51 = vor.u32 1.1754944e-38, %v155_v46  ;;  %vm154_vm6 = vcmp.eq.f32.partialorder %v153_v30, 8.507059e+37  ;;  %v229_v61 = vpop.permute.xlu2 %228 }
 0x291   :  { %v231_v1 = vadd.f32 %v229_v61, %v225_v62 }
 0x293   :  { %v352_v41 = vpop.eup %351 }
 0x294   :  { %v354_v42 = vpop.eup %353  ;;  %v268_v43 = vadd.f32 1.0, %v352_v41 }
 0x295   :  { %v145_v44 = vmul.f32 %v354_v42, %v143_v40  ;;  %vm150_vm3 = vweird.f32 %v354_v42 }
 0x296   :  { %355 = vrcp.f32 %v268_v43  ;;  %vm151_vm5 = vmor %vm149_vm4, %vm150_vm3  ;;  %v280_v59 = vand.u32 2147483648, %v268_v43  ;;  %v278_v33 = vand.u32 2147483647, %v268_v43  ;;  %vm274_vm8 = vweird.f32 %v268_v43 }
 0x297   :  { %v146_v21 = vsub.f32 1.0, %v145_v44 }
 0x298   :  { %v281_v0 = vor.u32 1.1754944e-38, %v280_v59  ;;  %vm279_vm10 = vcmp.eq.f32.partialorder %v278_v33, 8.507059e+37 }
 0x299   :  { %v147_v48 = vmul.f32 %v354_v42, %v146_v21 }
 0x29b   :  { %v148_v49 = vadd.f32 %v354_v42, %v147_v48 }
 0x29c   :  { %v356_v50 = vpop.eup %355 }
 0x29d   :  { %v270_v53 = vmul.f32 %v356_v50, %v268_v43  ;;  %v152_v54 = vsel %vm151_vm5, %v354_v42, %v148_v49  ;;  %vm275_vm7 = vweird.f32 %v356_v50 }
 0x29e   :  { %v157_v55 = vsel %vm154_vm6, %v156_v51, %v152_v54  ;;  %vm276_vm9 = vmor %vm274_vm8, %vm275_vm7 }
 0x29f   :  { %v271_v56 = vsub.f32 1.0, %v270_v53  ;;  %v159_v57 = vmul.f32 %v157_v55, %v106_v52 }
 0x2a1   :  { %v272_v60 = vmul.f32 %v356_v50, %v271_v56  ;;  %160 = vst [vmem:[#allocation2] sm:$0xff] %v159_v57 }
 0x2a3   :  { %v273_v63 = vadd.f32 %v356_v50, %v272_v60 }
 0x2a5   :  { %v277_v2 = vsel %vm276_vm9, %v356_v50, %v273_v63 }
 0x2a6   :  { %v282_v3 = vsel %vm279_vm10, %v281_v0, %v277_v2 }
 0x2a7   :  { %v284_v4 = vmul.f32 %v282_v3, %v231_v1 }
 0x2a9   :  { %286 = vst [vmem:[#allocation2 + $0x8] sm:$0xff] %v284_v4 }
 0x2aa   :  { %299 = dma.vmem_to_hbm [thread:$0]  %s292_s9, 256, %s294_s12, [#allocation3], %s387_s13, %s387_s13, %s388_s14  }
 0x2ab   :  { %381 = dma.done.wait [#allocation3], 256  }
 0x2ac   :  { %382 = vsyncadd [#allocation3], 4294967040 }
 0x2ad   :  { %304 = vsyncpa [#allocation3], 1 }

</bundles_post_ra>
